<compile_context>
chip_gen: v6e
topology: v6e:2x2x1
jax: 0.10.0
libtpu: 0.0.40
codegen_flags: <defaults>
</compile_context>

<pallas_src>
import functools

import jax
import jax.numpy as jnp
from jax.experimental import pallas as pl
from jax.experimental.pallas import tpu as pltpu


def _round_up(x, m):
    return ((x + m - 1) // m) * m


def _conf_reduce_kernel(obj_ref, cls_ref, max_ref, thr_ref, *, threshold, n_valid, tile_n):
    """Per (batch-tile, N-tile) step: conf = obj*cls, running max + running hinge^2 sum."""
    n_idx = pl.program_id(1)

    # Initialize accumulators on the first N-tile (output blocks stay resident
    # across the 'arbitrary' N axis).
    @pl.when(n_idx == 0)
    def _():
        max_ref[...] = jnp.full(max_ref.shape, -jnp.inf, dtype=max_ref.dtype)
        thr_ref[...] = jnp.zeros(thr_ref.shape, dtype=thr_ref.dtype)

    # Cast per-tile to f32 (input may arrive as bf16); math/accumulation in f32.
    obj = obj_ref[...].astype(jnp.float32)          # [tile_b, tile_n]
    cls_p = cls_ref[...].astype(jnp.float32)        # [tile_b, tile_n]
    # config.loss_target(obj, cls) == obj * cls (standard adversarial-patch config)
    conf = obj * cls_p                              # [tile_b, tile_n]

    # Mask the tail columns beyond the true N (input padded to a tile multiple).
    col = n_idx * tile_n + jax.lax.broadcasted_iota(jnp.int32, conf.shape, 1)
    valid = col < n_valid

    # 'max_approach' running max (masked lanes -> -inf).
    conf_for_max = jnp.where(valid, conf, -jnp.inf)
    max_ref[...] = jnp.maximum(
        max_ref[...], jnp.max(conf_for_max, axis=1, keepdims=True))

    # 'threshold_approach' running sum of max(conf - thr, 0)^2 (masked lanes -> 0).
    pen = jnp.maximum(conf - threshold, 0.0)
    pen = jnp.where(valid, pen * pen, 0.0)
    thr_ref[...] += jnp.sum(pen, axis=1, keepdims=True)


def _run_kernel(yolo_output, cls_id, threshold=0.3):
    B, N, _C = yolo_output.shape

    # Channel gather in the wrapper: the kernel only ever needs 2 of the C channels,
    # and this puts N on the lane axis. (Ideally fuse this slice with the YOLO head.)
    obj = yolo_output[:, :, 4]              # [B, N], N lane-dense
    cls_p = yolo_output[:, :, 5 + cls_id]   # [B, N]

    # N tiling: multiple of 128, capped at 4096 (few-hundred-KB double-buffered
    # working set -> comfortably under scoped VMEM on v5e/v6e/v7x while large enough
    # to sit near the HBM roofline).
    tile_n = min(4096, _round_up(N, 128))
    n_pad = _round_up(N, tile_n)
    if n_pad != N:
        pad = ((0, 0), (0, n_pad - N))
        obj = jnp.pad(obj, pad)
        cls_p = jnp.pad(cls_p, pad)
    n_tiles = n_pad // tile_n

    # Batch tiling: sublane-legal block (divisible by 8 or full extent).
    tile_b = 8 if (B % 8 == 0) else B
    b_tiles = B // tile_b

    kernel = functools.partial(
        _conf_reduce_kernel, threshold=threshold, n_valid=N, tile_n=tile_n)

    max_conf, thr_conf = pl.pallas_call(
        kernel,
        out_shape=(
            jax.ShapeDtypeStruct((B, 1), jnp.float32),
            jax.ShapeDtypeStruct((B, 1), jnp.float32),
        ),
        grid=(b_tiles, n_tiles),
        in_specs=[
            pl.BlockSpec((tile_b, tile_n), lambda b, n: (b, n)),
            pl.BlockSpec((tile_b, tile_n), lambda b, n: (b, n)),
        ],
        out_specs=(
            pl.BlockSpec((tile_b, 1), lambda b, n: (b, 0)),
            pl.BlockSpec((tile_b, 1), lambda b, n: (b, 0)),
        ),
        compiler_params=pltpu.CompilerParams(
            dimension_semantics=("parallel", "arbitrary")),
    )(obj, cls_p)
    return max_conf[:, 0], thr_conf[:, 0]


def yolov3_feature_output_manage_forward(yv3_output, loss_type, *, cls_id=0):
    """JAX/Pallas equivalent of the PyTorch module's forward()."""
    yolo_output = yv3_output[0]
    # Native dtype kept on the wire (no wrapper-side astype); kernel casts per tile.
    max_conf, thr_conf = _run_kernel(yolo_output, cls_id)
    if loss_type == "max_approach":
        return max_conf            # [B] (index not returned, matching the module)
    elif loss_type == "threshold_approach":
        # TODO(synk): the PyTorch branch also prints the unbound batch stack; side-effect print omitted.
        return thr_conf            # [B]
    else:
        raise ValueError(f"unknown loss_type {loss_type}")


def _reference(yolo_output, loss_type, cls_id=0, threshold=0.3):
    y = yolo_output.astype(jnp.float32)
    obj = y[:, :, 4]
    cls_p = y[:, :, 5 + cls_id]
    conf = obj * cls_p
    if loss_type == "max_approach":
        return jnp.max(conf, axis=1)
    pen = jnp.maximum(conf - threshold, 0.0) ** 2
    return jnp.sum(pen, axis=1)


if __name__ == "__main__":
    # Small synthetic shapes: batch=2, N_preds=200 (non-multiple of 128 to exercise
    # the masked tail tile), num_cls=8 -> C=13.
    B, N, NUM_CLS = 2, 200, 8
    C = 5 + NUM_CLS
    CLS_ID = 0

    key = jax.random.PRNGKey(0)
    # Sigmoid to mimic probability-like YOLO outputs in [0, 1].
    yolo_output = jax.nn.sigmoid(jax.random.normal(key, (B, N, C), dtype=jnp.float32))
    yv3_output = (yolo_output,)   # module indexes yv3_output[0]

    out_max = yolov3_feature_output_manage_forward(yv3_output, "max_approach", cls_id=CLS_ID)
    out_thr = yolov3_feature_output_manage_forward(yv3_output, "threshold_approach", cls_id=CLS_ID)
    jax.block_until_ready(out_max)
    jax.block_until_ready(out_thr)

    ref_max = _reference(yolo_output, "max_approach", CLS_ID)
    ref_thr = _reference(yolo_output, "threshold_approach", CLS_ID)

    assert out_max.shape == (B,) and out_thr.shape == (B,)
    assert jnp.allclose(out_max, ref_max, atol=1e-5, rtol=1e-5)
    assert jnp.allclose(out_thr, ref_thr, atol=1e-5, rtol=1e-5)

    print("KERNEL_OK")
</pallas_src>

<mosaic_0001>
module attributes {stable_mosaic.version = 11 : i64} {
  func.func @_conf_reduce_kernel(%arg0: i32, %arg1: i32, %arg2: memref<2x256xf32, #tpu.memory_space<vmem>>, %arg3: memref<2x256xf32, #tpu.memory_space<vmem>>, %arg4: memref<2x1xf32, #tpu.memory_space<vmem>>, %arg5: memref<2x1xf32, #tpu.memory_space<vmem>>) attributes {dimension_semantics = [#tpu.dimension_semantics<parallel>, #tpu.dimension_semantics<arbitrary>], iteration_bounds = array<i64: 1, 1>, scalar_prefetch = 0 : i64, scratch_operands = 0 : i64, tpu.core_type = #tpu.core_type<tc>, window_params = [{transform_indices = @transform_0, window_bounds = array<i64: 2, 256>}, {transform_indices = @transform_1, window_bounds = array<i64: 2, 256>}, {transform_indices = @transform_2, window_bounds = array<i64: 2, 1>}, {transform_indices = @transform_3, window_bounds = array<i64: 2, 1>}]} {
    %c0_i32 = arith.constant 0 : i32
    %0 = arith.cmpi eq, %arg1, %c0_i32 : i32
    %1 = arith.extui %0 : i1 to i32
    %c0_i32_0 = arith.constant 0 : i32
    %2 = arith.cmpi ne, %1, %c0_i32_0 : i32
    scf.if %2 {
      %cst_17 = arith.constant 0xFF800000 : f32
      %31 = vector.broadcast %cst_17 : f32 to vector<2x1xf32>
      %c0_18 = arith.constant 0 : index
      %c0_19 = arith.constant 0 : index
      %32 = vector.load %arg4[%c0_18, %c0_19] : memref<2x1xf32, #tpu.memory_space<vmem>>, vector<2x1xf32>
      tpu.vector_store %arg4[%c0_18, %c0_19], %31 {strides = array<i32>} : memref<2x1xf32, #tpu.memory_space<vmem>>, vector<2x1xf32>,
      %cst_20 = arith.constant 0.000000e+00 : f32
      %33 = vector.broadcast %cst_20 : f32 to vector<2x1xf32>
      %c0_21 = arith.constant 0 : index
      %c0_22 = arith.constant 0 : index
      %34 = vector.load %arg5[%c0_21, %c0_22] : memref<2x1xf32, #tpu.memory_space<vmem>>, vector<2x1xf32>
      tpu.vector_store %arg5[%c0_21, %c0_22], %33 {strides = array<i32>} : memref<2x1xf32, #tpu.memory_space<vmem>>, vector<2x1xf32>,
    } else {
    }
    %c0 = arith.constant 0 : index
    %c0_1 = arith.constant 0 : index
    %3 = vector.load %arg2[%c0, %c0_1] : memref<2x256xf32, #tpu.memory_space<vmem>>, vector<2x256xf32>
    %c0_2 = arith.constant 0 : index
    %c0_3 = arith.constant 0 : index
    %4 = vector.load %arg3[%c0_2, %c0_3] : memref<2x256xf32, #tpu.memory_space<vmem>>, vector<2x256xf32>
    %5 = arith.mulf %3, %4 : vector<2x256xf32>
    %c256_i32 = arith.constant 256 : i32
    %6 = arith.muli %arg1, %c256_i32 : i32
    %7 = tpu.iota {dimensions = array<i32: 1>} : vector<2x256xi32>
    %8 = vector.broadcast %6 : i32 to vector<2x256xi32>
    %9 = arith.addi %8, %7 : vector<2x256xi32>
    %c200_i32 = arith.constant 200 : i32
    %10 = vector.broadcast %c200_i32 : i32 to vector<2x256xi32>
    %11 = arith.cmpi slt, %9, %10 : vector<2x256xi32>
    %cst = arith.constant 0xFF800000 : f32
    %12 = vector.broadcast %cst : f32 to vector<2x256xf32>
    %13 = arith.select %11, %5, %12 : vector<2x256xi1>, vector<2x256xf32>
    %c0_4 = arith.constant 0 : index
    %c0_5 = arith.constant 0 : index
    %14 = vector.load %arg4[%c0_4, %c0_5] : memref<2x1xf32, #tpu.memory_space<vmem>>, vector<2x1xf32>
    %cst_6 = arith.constant dense<0xFF800000> : vector<2xf32>
    %15 = vector.multi_reduction <maximumf>, %13, %cst_6 [1] : vector<2x256xf32> to vector<2xf32>
    %16 = vector.shape_cast %15 : vector<2xf32> to vector<2x1xf32>
    %17 = arith.maximumf %14, %16 : vector<2x1xf32>
    %c0_7 = arith.constant 0 : index
    %c0_8 = arith.constant 0 : index
    %18 = vector.load %arg4[%c0_7, %c0_8] : memref<2x1xf32, #tpu.memory_space<vmem>>, vector<2x1xf32>
    tpu.vector_store %arg4[%c0_7, %c0_8], %17 {strides = array<i32>} : memref<2x1xf32, #tpu.memory_space<vmem>>, vector<2x1xf32>,
    %cst_9 = arith.constant 3.000000e-01 : f32
    %19 = vector.broadcast %cst_9 : f32 to vector<2x256xf32>
    %20 = arith.subf %5, %19 : vector<2x256xf32>
    %cst_10 = arith.constant 0.000000e+00 : f32
    %21 = vector.broadcast %cst_10 : f32 to vector<2x256xf32>
    %22 = arith.maximumf %20, %21 : vector<2x256xf32>
    %23 = arith.mulf %22, %22 : vector<2x256xf32>
    %cst_11 = arith.constant 0.000000e+00 : f32
    %24 = vector.broadcast %cst_11 : f32 to vector<2x256xf32>
    %25 = arith.select %11, %23, %24 : vector<2x256xi1>, vector<2x256xf32>
    %c0_12 = arith.constant 0 : index
    %c0_13 = arith.constant 0 : index
    %26 = vector.load %arg5[%c0_12, %c0_13] : memref<2x1xf32, #tpu.memory_space<vmem>>, vector<2x1xf32>
    %cst_14 = arith.constant dense<0.000000e+00> : vector<2xf32>
    %27 = vector.multi_reduction <add>, %25, %cst_14 [1] : vector<2x256xf32> to vector<2xf32>
    %28 = vector.shape_cast %27 : vector<2xf32> to vector<2x1xf32>
    %29 = arith.addf %26, %28 : vector<2x1xf32>
    %c0_15 = arith.constant 0 : index
    %c0_16 = arith.constant 0 : index
    %30 = vector.load %arg5[%c0_15, %c0_16] : memref<2x1xf32, #tpu.memory_space<vmem>>, vector<2x1xf32>
    tpu.vector_store %arg5[%c0_15, %c0_16], %29 {strides = array<i32>} : memref<2x1xf32, #tpu.memory_space<vmem>>, vector<2x1xf32>,
    return
  }
  func.func @transform_0(%arg0: i32, %arg1: i32) -> (i32, i32) {
    %c0_i32 = arith.constant 0 : i32
    return %arg0, %arg1 : i32, i32
  }
  func.func @transform_1(%arg0: i32, %arg1: i32) -> (i32, i32) {
    %c0_i32 = arith.constant 0 : i32
    return %arg0, %arg1 : i32, i32
  }
  func.func @transform_2(%arg0: i32, %arg1: i32) -> (i32, i32) {
    %c0_i32 = arith.constant 0 : i32
    %c0_i32_0 = arith.constant 0 : i32
    return %arg0, %c0_i32 : i32, i32
  }
  func.func @transform_3(%arg0: i32, %arg1: i32) -> (i32, i32) {
    %c0_i32 = arith.constant 0 : i32
    %c0_i32_0 = arith.constant 0 : i32
    return %arg0, %c0_i32 : i32, i32
  }
}

</mosaic_0001>

<bundles_post_ra>
// kernel: tpu_custom_call.1
= control target key start
LH: loop header
LB: loop body
LE: loop exit
PB: predicated region body
PF: predicated region fallthrough
CT: control target
= control target key end

     0   :  { %9 = vsyncpa [#allocation3], 0  ;;  %s216_s0 = inlined_call_operand.hbm [shape: f32[2,256], index: 0, kind: input, shape index: {}]   ;;  %s217_s1 = inlined_call_operand.hbm [shape: f32[2,256], index: 1, kind: input, shape index: {}]   ;;  %s218_s2 = inlined_call_operand.vmem [shape: f32[2,1], index: 2, kind: output, shape index: {0}]   ;;  %s219_s3 = inlined_call_operand.vmem [shape: f32[2,1], index: 3, kind: output, shape index: {1}]  }
   0x1   :  { %10 = vsyncpa [#allocation5], 0  ;;  %s163_s12 = smov [#allocation2]   ;;  %s164_s14 = smov [#allocation4]  }
   0x2   :  { %s17_s13 = sshll.u32 %s163_s12, 4  ;;  %s27_s15 = sshll.u32 %s164_s14, 4  ;;  %s18_s13 = int_to_ptr.vmem [resolvable:$true] %s17_s13  ;;  %s28_s15 = int_to_ptr.vmem [resolvable:$true] %s27_s15 }
   0x3   :  { %s127_s16 = scalar_lea.vmem %s18_s13, 64  ;;  %p132_p1 = scmp.lt.s32.totalorder %s18_s13, %s18_s13 }
   0x4   :  { %p128_p0 = scmp.ne.s32.totalorder %s18_s13, %s127_s16  ;;  %p133_p2 = scmp.lt.s32.totalorder %s127_s16, %s127_s16 }
   0x6   :  { %p134_p3 = por %p133_p2, %p132_p1 }
   0x8   :  { %p135_p4 = pnand %p134_p3, %p128_p0 }
   0xa   :  { %138 = shalt.err (!%p135_p4)
}
   0xb   :  { %20 = dma.hbm_to_vmem [thread:$0]  %s216_s0, 64, %s18_s13, [#allocation3]  }
   0xc   :  { %s147_s19 = scalar_lea.vmem %s28_s15, 64  ;;  %p152_p6 = scmp.lt.s32.totalorder %s28_s15, %s28_s15 }
   0xd   :  { %p148_p5 = scmp.ne.s32.totalorder %s28_s15, %s147_s19  ;;  %p153_p7 = scmp.lt.s32.totalorder %s147_s19, %s147_s19 }
   0xf   :  { %p154_p8 = por %p153_p7, %p152_p6 }
  0x11   :  { %p155_p9 = pnand %p154_p8, %p148_p5 }
  0x13   :  { %158 = shalt.err (!%p155_p9)
}
  0x14   :  { %30 = dma.hbm_to_vmem [thread:$0]  %s217_s1, 64, %s28_s15, [#allocation5]  }
  0x15   :  { %159 = dma.done.wait [#allocation3], 64  }
  0x16   :  { %160 = vsyncadd [#allocation3], 4294967232 }
  0x17   :  { %161 = dma.done.wait [#allocation5], 64  }
  0x18   :  { %162 = vsyncadd [#allocation5], 4294967232  ;;  %v48_v0 = vlaneseq  ;;  %vm41_vm0 = vcmask 1024   ;;  %v165_v1 = vmov 1983009808   ;;  %v166_v4 = vmov -inf  }
  0x19   :  { %v58_v2 = vunpack.c.l.s4 %v165_v1  ;;  %42 = vst.msk [vmem:[%s218_s2] sm:$0x3] %vm41_vm0, %v166_v4  ;;  %v44_v8 = vld [vmem:[#allocation2] sm:$0xf]  ;;  %v45_v9 = vld [vmem:[#allocation4] sm:$0xf] }
  0x1a   :  { %v61_v3 = vshrl.u32 %v48_v0, 7  ;;  %v49_v5 = vand.u32 127, %v48_v0  ;;  %v46_v11 = vmul.f32 %v45_v9, %v44_v8  ;;  %vm70_vm1 = vcmask 1041408  }
  0x1b   :  { %v59_v6 = vunpack.c.0.s8 %v58_v2  ;;  %v167_v27 = vmov 0.0  }
  0x1c   :  { %v50_v10 = vadd.s32 128, %v49_v5  ;;  %v113_v13 = vadd.f32 -0.3, %v46_v11  ;;  %43 = vst.msk [vmem:[%s219_s3] sm:$0x3] %vm41_vm0, %v167_v27 }
  0x1d   :  { %v62_v7 = vsub.s32 %v59_v6, %v61_v3 }
  0x1e   :  { %vm55_vm2 = vcmp.lt.s32.totalorder %v50_v10, 200  ;;  %v80_v15 = vmax.f32 %v113_v13, 0.0 }
  0x1f   :  { %v63_v12 = vrot.slane %v46_v11, %v62_v7 }
  0x20   :  { %v81_v18 = vmul.f32 %v80_v15, %v80_v15  ;;  %v69_v28 = vld [vmem:[%s218_s2] sm:$0x3] }
  0x21   :  { %v64_v14 = vcombine.high %v63_v12, %v63_v12  ;;  %v71_v16 = vsel %vm70_vm1, %v63_v12, -inf }
  0x22   :  { %v89_v21 = vrot.slane %v81_v18, %v62_v7 }
  0x23   :  { %v68_v17 = vsel %vm55_vm2, %v64_v14, -inf  ;;  %v95_v31 = vld [vmem:[%s219_s3] sm:$0x3] }
  0x24   :  { %v72_v19 = vsel %vm70_vm1, %v68_v17, -inf  ;;  %v90_v22 = vcombine.high %v89_v21, %v89_v21  ;;  %v96_v23 = vsel %vm70_vm1, %v89_v21, 0.0 }
  0x25   :  { %v73_v20 = vmax.f32 %v71_v16, %v72_v19 }
  0x26   :  { %v94_v24 = vsel %vm55_vm2, %v90_v22, 0.0 }
  0x27   :  { %74 = vmax.xlane.f32.xlu0 %v73_v20  ;;  %v97_v25 = vsel %vm70_vm1, %v94_v24, 0.0 }
  0x28   :  { %v98_v26 = vadd.f32 %v97_v25, %v96_v23 }
  0x2b   :  { %99 = vadd.xlane.f32.xlu0 %v98_v26 }
  0xb0   :  { %v75_v29 = vpop.xlane.xlu0 %74 }
  0xb1   :  { %v76_v30 = vmax.f32 %v69_v28, %v75_v29 }
  0xb3   :  { %78 = vst.msk [vmem:[%s218_s2] sm:$0x3] %vm41_vm0, %v76_v30 }
  0xb4   :  { %v100_v32 = vpop.xlane.xlu0 %99 }
  0xb5   :  { %v101_v33 = vadd.f32 %v100_v32, %v95_v31 }
  0xb7   :  { %102 = vst.msk [vmem:[%s219_s3] sm:$0x3] %vm41_vm0, %v101_v33 }
  0xb8   :  { %111 = vsyncpa [#allocation3], 1 }
  0xb9   :  { %112 = vsyncpa [#allocation5], 1 }

</bundles_post_ra>
